<compile_context>
chip_gen: v5e
topology: v5e:2x2
jax: 0.10.0
libtpu: 0.0.40
codegen_flags: <defaults>
</compile_context>

<pallas_src>
import math
import functools

import jax
import jax.numpy as jnp
from jax import lax
from jax.experimental import pallas as pl
from jax.experimental.pallas import tpu as pltpu


# ----------------------------- kernels ------------------------------------ #

def _pe_add_kernel(x_ref, pe_ref, o_ref):
    # eval mode: nn.Dropout is identity, so forward == x + pe[:S]
    # (TS, B, D) + (TS, 1, D) broadcast add; pe pre-cast to x.dtype wrapper-side.
    o_ref[...] = x_ref[...] + pe_ref[...]


def _hash_bits_u32(s_idx, b_idx, d_idx, seed_u32):
    """Counter-based PRNG: murmur3-fmix32 over the global element index."""
    x = (s_idx.astype(jnp.uint32) * jnp.uint32(0x9E3779B1)
         ^ b_idx.astype(jnp.uint32) * jnp.uint32(0x85EBCA77)
         ^ d_idx.astype(jnp.uint32) * jnp.uint32(0xC2B2AE3D)
         ^ (seed_u32 * jnp.uint32(0x27D4EB2F)))
    x = x ^ (x >> 16)
    x = x * jnp.uint32(0x85EBCA6B)
    x = x ^ (x >> 13)
    x = x * jnp.uint32(0xC2B2AE35)
    x = x ^ (x >> 16)
    return x


def _pe_add_dropout_kernel(seed_ref, x_ref, pe_ref, o_ref, *, p):
    # training mode: inverted dropout, keep-prob (1-p), scaled by 1/(1-p).
    y = x_ref[...] + pe_ref[...]
    ts, B, D = x_ref.shape            # static block shape
    shape = y.shape

    # Global (s, b, d) indices -> mask is independent of the tile size chosen
    # for a given generation / VMEM budget (reproducible across configs).
    s_idx = lax.broadcasted_iota(jnp.int32, shape, 0) + pl.program_id(0) * ts
    b_idx = lax.broadcasted_iota(jnp.int32, shape, 1)
    d_idx = lax.broadcasted_iota(jnp.int32, shape, 2)
    bits = _hash_bits_u32(s_idx, b_idx, d_idx, seed_ref[0].astype(jnp.uint32))

    threshold = jnp.uint32(min(int(round(p * (2.0 ** 32))), 2 ** 32 - 1))
    keep = bits >= threshold                              # P(keep) = 1 - p
    scale = jnp.asarray(1.0 / (1.0 - p), dtype=y.dtype)   # constant, single mul
    o_ref[...] = jnp.where(keep, y * scale, jnp.zeros_like(y))


# --------------------------- parameter setup ------------------------------- #

def init_positional_encoding(d_model, max_len=1000, dtype=jnp.float32):
    """Deterministically build the pe buffer exactly like the PyTorch __init__."""
    position = jnp.arange(max_len, dtype=jnp.float32)[:, None]                 # (L,1)
    div_term = jnp.exp(
        jnp.arange(0, d_model, 2, dtype=jnp.float32) * (-math.log(10000.0) / d_model)
    )                                                                          # (D/2,)
    angles = position * div_term                                               # (L,D/2)
    pe = jnp.zeros((max_len, d_model), dtype=jnp.float32)
    pe = pe.at[:, 0::2].set(jnp.sin(angles))
    pe = pe.at[:, 1::2].set(jnp.cos(angles))
    # unsqueeze(0).transpose(0,1) -> (max_len, 1, d_model)
    return pe[:, None, :].astype(dtype)


# ------------------------------ wrapper ------------------------------------ #

def _tpu_vmem_capacity_bytes():
    try:
        info = pltpu.get_tpu_info()
        cap = getattr(info, "vmem_capacity_bytes", None)
        if cap is not None and int(cap) > 0:
            return int(cap)
    except Exception:
        pass
    return None


def _vmem_budget_and_limit():
    """Per-generation live-block budget + explicit scoped-VMEM limit."""
    cap = _tpu_vmem_capacity_bytes()
    if cap is None:
        # Unknown hardware (e.g. interpret mode): conservative v5e-safe budget.
        return 12 << 20, None
    # Live double-buffered footprint well under the scoped limit everywhere:
    # 128 MiB (v5e/v6e) -> 16 MiB budget; 64 MiB (v7x) -> 12 MiB budget.
    budget = int(min(max(cap // 8, 12 << 20), 28 << 20))
    vmem_limit = int(min(cap // 2, 64 << 20))
    return budget, vmem_limit


def _pick_seq_tile(S, B, D, itemsize, budget_bytes):
    # Live pipelined buffers per step: 2 x (x block + out block + pe block).
    bytes_per_seq_row = (2 * B + 1) * D * itemsize
    ts = max(1, budget_bytes // (2 * bytes_per_seq_row))
    # Keep >=4 evenly sized grid steps so v7x's two TensorCores both run
    # (dimension_semantics=("parallel",) needs grid > 1; no cost on v5e/v6e).
    ts = min(ts, max(1, pl.cdiv(S, 4)))
    return int(min(S, ts))


def positional_encoding_forward(x, pe, *, p=0.1, training=False, seed=0,
                                small_input_fallback_bytes=1 << 20):
    """Forward of PositionalEncoding: dropout(x + pe[:S]).

    x: (S, B, D); pe: (max_len, 1, D).  Returns (S, B, D) in x.dtype.

    Note: no input/output aliasing is used -- relying on aliasing without
    caller-side donation (jit donate_argnums) makes XLA insert a defensive
    copy that costs a full extra HBM read+write.
    """
    S, B, D = x.shape
    if S > pe.shape[0]:
        raise ValueError("sequence length exceeds positional-encoding max_len")

    # Pre-cast pe once so the kernels do no per-element casting.
    if pe.dtype != x.dtype:
        pe = pe.astype(x.dtype)

    if training and p >= 1.0:
        # torch nn.Dropout(p=1.0) zeroes everything in training mode.
        return jnp.zeros_like(x)

    eval_mode = (not training) or p == 0.0
    itemsize = jnp.dtype(x.dtype).itemsize

    # Small-problem fast path: a standalone pallas_call is pure fixed overhead
    # below ~1 MiB; fuse into neighbouring ops / plain XLA instead.
    if eval_mode and S * B * D * itemsize < small_input_fallback_bytes:
        return x + pe[:S]

    budget, vmem_limit = _vmem_budget_and_limit()
    ts = _pick_seq_tile(S, B, D, itemsize, budget)
    grid = (pl.cdiv(S, ts),)

    # Last two block dims equal the full array dims -> (8,128) rule satisfied.
    x_spec = pl.BlockSpec((ts, B, D), lambda i: (i, 0, 0))
    # pe rows are selected by the BlockSpec DMA (no wrapper-side pe[:S] copy);
    # the size-1 batch axis broadcasts in-kernel.
    pe_spec = pl.BlockSpec((ts, 1, D), lambda i: (i, 0, 0))

    cp_kwargs = dict(dimension_semantics=("parallel",))
    if vmem_limit is not None:
        cp_kwargs["vmem_limit_bytes"] = vmem_limit
    params = pltpu.CompilerParams(**cp_kwargs)

    out_shape = jax.ShapeDtypeStruct((S, B, D), x.dtype)

    if eval_mode:
        return pl.pallas_call(
            _pe_add_kernel,
            out_shape=out_shape,
            grid=grid,
            in_specs=[x_spec, pe_spec],
            out_specs=x_spec,
            compiler_params=params,
        )(x, pe)

    seed_arr = jnp.array([seed], dtype=jnp.int32)
    kernel = functools.partial(_pe_add_dropout_kernel, p=float(p))
    return pl.pallas_call(
        kernel,
        out_shape=out_shape,
        grid=grid,
        in_specs=[pl.BlockSpec(memory_space=pltpu.SMEM), x_spec, pe_spec],
        out_specs=x_spec,
        compiler_params=params,
    )(seed_arr, x, pe)


# -------------------------------- main ------------------------------------- #

if __name__ == "__main__":
    key = jax.random.PRNGKey(0)
    # Demo shapes chosen lane/sublane-dense for f32: d_model=128 (full 128
    # lanes), batch=8 (full 8 sublanes), seq=16.
    S, B, D = 16, 8, 128
    x = jax.random.normal(key, (S, B, D), dtype=jnp.float32)

    pe = init_positional_encoding(D, max_len=1000, dtype=x.dtype)
    ref = x + pe[:S]                                # eval-mode reference

    # Eval path (dropout is identity).  Fast path disabled so the Pallas
    # kernel itself is exercised at this small demo size.
    out = positional_encoding_forward(x, pe, p=0.1, training=False,
                                      small_input_fallback_bytes=0)
    out = jax.block_until_ready(out)
    assert out.shape == (S, B, D)
    assert jnp.allclose(out, ref, atol=1e-5), "mismatch vs eval reference"

    # Training path: every element is either dropped (0) or equal to
    # (x + pe) / (1 - p), and the drop fraction is roughly p.
    p = 0.1
    out_tr = positional_encoding_forward(x, pe, p=p, training=True, seed=42,
                                         small_input_fallback_bytes=0)
    out_tr = jax.block_until_ready(out_tr)
    scaled = ref / (1.0 - p)
    is_zero = jnp.abs(out_tr) < 1e-30
    is_kept = jnp.abs(out_tr - scaled) < 1e-4
    assert bool(jnp.all(is_zero | is_kept)), \
        "dropout output is neither zero nor scaled keep"
    drop_frac = float(jnp.mean(is_zero.astype(jnp.float32)))
    assert 0.01 <= drop_frac <= 0.30, f"unexpected drop fraction {drop_frac}"

    print("KERNEL_OK")
</pallas_src>

<mosaic_0001>
module attributes {stable_mosaic.version = 11 : i64} {
  func.func @_pe_add_kernel(%arg0: i32, %arg1: memref<4x8x128xf32, #tpu.memory_space<vmem>>, %arg2: memref<4x1x128xf32, #tpu.memory_space<vmem>>, %arg3: memref<4x8x128xf32, #tpu.memory_space<vmem>>) attributes {dimension_semantics = [#tpu.dimension_semantics<parallel>], iteration_bounds = array<i64: 4>, scalar_prefetch = 0 : i64, scratch_operands = 0 : i64, tpu.core_type = #tpu.core_type<tc>, window_params = [{transform_indices = @transform_0, window_bounds = array<i64: 4, 8, 128>}, {transform_indices = @transform_1, window_bounds = array<i64: 4, 1, 128>}, {transform_indices = @transform_2, window_bounds = array<i64: 4, 8, 128>}]} {
    %c0 = arith.constant 0 : index
    %c0_0 = arith.constant 0 : index
    %c0_1 = arith.constant 0 : index
    %0 = vector.load %arg1[%c0, %c0_0, %c0_1] : memref<4x8x128xf32, #tpu.memory_space<vmem>>, vector<4x8x128xf32>
    %c0_2 = arith.constant 0 : index
    %c0_3 = arith.constant 0 : index
    %c0_4 = arith.constant 0 : index
    %1 = vector.load %arg2[%c0_2, %c0_3, %c0_4] : memref<4x1x128xf32, #tpu.memory_space<vmem>>, vector<4x1x128xf32>
    %2 = vector.broadcast %1 : vector<4x1x128xf32> to vector<4x8x128xf32>
    %3 = arith.addf %0, %2 : vector<4x8x128xf32>
    %c0_5 = arith.constant 0 : index
    %c0_6 = arith.constant 0 : index
    %c0_7 = arith.constant 0 : index
    %4 = vector.load %arg3[%c0_5, %c0_6, %c0_7] : memref<4x8x128xf32, #tpu.memory_space<vmem>>, vector<4x8x128xf32>
    tpu.vector_store %arg3[%c0_5, %c0_6, %c0_7], %3 {strides = array<i32>} : memref<4x8x128xf32, #tpu.memory_space<vmem>>, vector<4x8x128xf32>,
    return
  }
  func.func @transform_0(%arg0: i32) -> (i32, i32, i32) {
    %c0_i32 = arith.constant 0 : i32
    %c0_i32_0 = arith.constant 0 : i32
    %c0_i32_1 = arith.constant 0 : i32
    return %arg0, %c0_i32, %c0_i32_0 : i32, i32, i32
  }
  func.func @transform_1(%arg0: i32) -> (i32, i32, i32) {
    %c0_i32 = arith.constant 0 : i32
    %c0_i32_0 = arith.constant 0 : i32
    %c0_i32_1 = arith.constant 0 : i32
    return %arg0, %c0_i32, %c0_i32_0 : i32, i32, i32
  }
  func.func @transform_2(%arg0: i32) -> (i32, i32, i32) {
    %c0_i32 = arith.constant 0 : i32
    %c0_i32_0 = arith.constant 0 : i32
    %c0_i32_1 = arith.constant 0 : i32
    return %arg0, %c0_i32, %c0_i32_0 : i32, i32, i32
  }
}

</mosaic_0001>

<bundles_post_ra>
// kernel: tpu_custom_call.1
= control target key start
LH: loop header
LB: loop body
LE: loop exit
PB: predicated region body
PF: predicated region fallthrough
CT: control target
= control target key end

     0   :  { %7 = vsyncpa [#allocation3], 0  ;;  %s742_s0 = inlined_call_operand.hbm [shape: f32[16,8,128], index: 0, kind: input, shape index: {}]   ;;  %s743_s1 = inlined_call_operand.hbm [shape: f32[1000,1,128], index: 1, kind: input, shape index: {}]   ;;  %s744_s2 = inlined_call_operand.hbm [shape: f32[16,8,128], index: 2, kind: output, shape index: {}]  }
   0x1   :  { %9 = vsyncpa [#allocation3 + $0x1], 0 }
   0x2   :  { %10 = vsyncpa [#allocation6], 0 }
   0x3   :  { %12 = vsyncpa [#allocation6 + $0x1], 0 }
   0x4   :  { %13 = vsyncpa [#allocation4], 0 }
   0x5   :  { %15 = vsyncpa [#allocation4 + $0x1], 0  ;;  %s581_s9 = smov 0   ;;  %s583_s10 = smov 0  }
   0x6   :  { %s585_s11 = smov 0   ;;  %s587_s12 = smov 0  }
   0x7 LB: > { %s602_s13 = sadd.s32 4294967295, %s558_s12   ;;  %s348_s14 = sadd.s32 4294967294, %s558_s12   ;;  %s558_s12 = sphi %s587_s12, %s754_s12   ;;  %s554_s11 = sphi %s585_s11, %s753_s11   ;;  %s550_s10 = sphi %s583_s10, %s752_s10   ;;  %s546_s9 = sphi %s581_s9, %s751_s9  }
   0x8   : > { %s606_s15 = sadd.s32 1, %s558_s12   ;;  %s28_s16 = sadd.s32 1, %s554_s11 }
   0x9   : > { %s25_s17 = ssub.s32 %s558_s12, %s606_s15  ;;  %p35_p0 = scmp.ne.s32.totalorder %s554_s11, %s550_s10 }
   0xa   : > { %p26_p1 = scmp.eq.s32.totalorder %s25_s17, 0  ;;  %p36_p2 = scmp.eq.s32.totalorder %s558_s12, 0 }
   0xb   : > { %p41_p3 = scmp.ne.s32.totalorder %s550_s10, %s546_s9  ;;  %p42_p4 = scmp.eq.s32.totalorder %s602_s13, 0 }
   0xc   : > { %s618_s18 = scalar_select %p26_p1, %s554_s11, %s28_s16  }
   0xd   : > { %p620_p5 = por %p36_p2, %p35_p0  ;;  %p624_p6 = por %p42_p4, %p41_p3 }
   0xe   : > { %p91_p7 = scmp.eq.s32.totalorder %s602_s13, 3  ;;  %p97_p8 = scmp.eq.s32.totalorder %s348_s14, 3 }
   0xf   : > { %p384_p9 = scmp.lt.s32.totalorder %s558_s12, 4  ;;  %s639_s23 = sand.u32 1, %s554_s11  }
  0x10   : > { %p630_p10 = por %p91_p7, %p35_p0  ;;  %p634_p11 = por %p97_p8, %p41_p3 }
  0x11   : > { %s365_s24 = sshll.u32 %s558_s12, 5  ;;  %s351_s25 = sshll.u32 %s639_s23, 5 }
  0x12   : > { %s126_s28 = scalar_lea.hbm %s742_s0, %s365_s24  ;;  %s121_s30 = scalar_lea.vmem [#allocation2], %s351_s25 }
  0x13   : > { %s127_s29 = sshll.u32 %s126_s28, 4  ;;  %s129_s3 = sshll.u32 %s121_s30, 4  ;;  %s128_s29 = int_to_ptr.hbm [resolvable:$true] %s127_s29  ;;  %s130_s3 = int_to_ptr.vmem [resolvable:$true] %s129_s3 }
  0x14   : > { %p648_p12 = pnand %p384_p9, %p620_p5  ;;  %p356_p13 = scmp.ge.s32.totalorder %s558_s12, 1 }
  0x15   : > { %p158_p0 = scmp.lt.s32.totalorder %s558_s12, 5  ;;  %s118_s5 = scalar_lea.sflag [#allocation3], %s639_s23 }
  0x16   : > { %s428_s6 = sshra.s32 %s128_s29, 4  ;;  %p432_p2 = pneg %p648_p12  ;;  %s429_s6 = int_to_ptr.hbm [resolvable:$true] %s428_s6 }
  0x17   : > { %s430_s7 = scalar_lea.hbm %s429_s6, 32  ;;  %s435_s16 = scalar_lea.hbm %s742_s0, 128 }
  0x18   : > { %p431_p1 = scmp.ne.s32.totalorder %s429_s6, %s430_s7  ;;  %p436_p5 = scmp.lt.s32.totalorder %s429_s6, %s742_s0 }
  0x19   : > { %p437_p7 = scmp.lt.s32.totalorder %s435_s16, %s430_s7 }
  0x1a   : > { %p433_p3 = pnand %p432_p2, %p431_p1 }
  0x1b   : > { %p438_p8 = por %p437_p7, %p436_p5 }
  0x1c   : > { %p434_p4 = pneg %p433_p3 }
  0x1e   : > { %p439_p9 = pnand %p438_p8, %p434_p4 }
  0x20   : > { %442 = shalt.err (!%p439_p9)
}
  0x21   : > { %s560_s24 = smov 128   ;;  %s561_s25 = smov 8  }
  0x22   : > { %376 = dma.hbm_to_vmem [thread:$0]  (!%p648_p12), %s128_s29, 512, %s130_s3, %s118_s5, %s560_s24, %s560_s24, %s561_s25  }
  0x23   : > { %p672_p1 = pnand %p356_p13, %p158_p0  ;;  %s354_s27 = sshll.u32 %s639_s23, 2 }
  0x24   : > { %s355_s28 = sshll.u32 %s558_s12, 2  ;;  %s143_s14 = scalar_lea.vmem [#allocation5], %s354_s27 }
  0x25   : > { %s147_s7 = scalar_lea.hbm %s743_s1, %s355_s28  ;;  %s150_s16 = sshll.u32 %s143_s14, 4  ;;  %s151_s16 = int_to_ptr.vmem [resolvable:$true] %s150_s16 }
  0x26   : > { %s148_s8 = sshll.u32 %s147_s7, 4  ;;  %s140_s17 = scalar_lea.sflag [#allocation6], %s639_s23  ;;  %s149_s8 = int_to_ptr.hbm [resolvable:$true] %s148_s8 }
  0x27   : > { %s458_s19 = sshra.s32 %s149_s8, 4  ;;  %s465_s24 = scalar_lea.hbm %s743_s1, 1000  ;;  %s459_s19 = int_to_ptr.hbm [resolvable:$true] %s458_s19 }
  0x28   : > { %s460_s29 = scalar_lea.hbm %s459_s19, 4  ;;  %p466_p4 = scmp.lt.s32.totalorder %s459_s19, %s743_s1 }
  0x29   : > { %p461_p3 = scmp.ne.s32.totalorder %s459_s19, %s460_s29  ;;  %p467_p5 = scmp.lt.s32.totalorder %s465_s24, %s460_s29 }
  0x2b   : > { %p463_p13 = pnand %p461_p3, %p432_p2  ;;  %p468_p7 = por %p467_p5, %p466_p4 }
  0x2d   : > { %p464_p0 = pneg %p463_p13 }
  0x2f   : > { %p469_p8 = pnand %p468_p7, %p464_p0 }
  0x31   : > { %472 = shalt.err (!%p469_p8)
}
  0x32   : > { %s562_s23 = smov 16   ;;  %s563_s27 = smov 1  }
  0x33   : > { %379 = dma.hbm_to_vmem [thread:$0]  (!%p648_p12), %s149_s8, 64, %s151_s16, %s140_s17, %s562_s23, %s562_s23, %s563_s27  }
  0x34   : > { %162 = sbr.rel (%p672_p1) target bundleno = 77 (0x4d), region = 28  ;;  %s696_s30 = sand.u32 (!%p672_p1), 1, %s550_s10  }
  0x35   : > { %s357_s6 = sshll.u32 (!%p672_p1), %s696_s30, 5  ;;  %s165_s7 = scalar_lea.sflag (!%p672_p1), [#allocation3], %s696_s30 }
  0x36   : > { %s168_s14 = scalar_lea.vmem (!%p672_p1), [#allocation2], %s357_s6 }
  0x39   : > { %533 = dma.done.wait (%p624_p6), %s165_s7, 512  }
  0x3a   : > { %535 = vsyncadd (%p624_p6), %s165_s7, 4294966784  ;;  %s358_s4 = sshll.u32 %s696_s30, 2  ;;  %s175_s26 = scalar_lea.sflag [#allocation6], %s696_s30 }
  0x3b   : > { %s178_s8 = scalar_lea.vmem [#allocation5], %s358_s4 }
  0x3c   : > { %537 = dma.done.wait (%p624_p6), %s175_s26, 64  }
  0x3d   : > { %539 = vsyncadd (%p624_p6), %s175_s26, 4294967232  ;;  %s366_s16 = sshll.u32 %s602_s13, 5  ;;  %v208_v0 = vld [vmem:[%s168_s14] sm:$0xff]  ;;  %s204_s3 = scalar_lea.vmem [#allocation7], %s357_s6  ;;  %v209_v2 = vld [vmem:[%s168_s14 + $0x8] sm:$0xff] }
  0x3e   : > { %s248_s29 = scalar_lea.hbm %s744_s2, %s366_s16  ;;  %v424_v1 = vld [vmem:[%s178_s8] ss:$0 sm:$0xff]  ;;  %s249_s5 = sshll.u32 %s204_s3, 4  ;;  %v425_v3 = vld [vmem:[%s178_s8 + $0x1] ss:$0 sm:$0xff]  ;;  %v210_v5 = vld [vmem:[%s168_s14 + $0x10] sm:$0xff]  ;;  %s250_s5 = int_to_ptr.vmem [resolvable:$true] %s249_s5 }
  0x3f   : > { %v228_v4 = vadd.f32 %v424_v1, %v208_v0  ;;  %v426_v6 = vld [vmem:[%s178_s8 + $0x2] ss:$0 sm:$0xff]  ;;  %s251_s24 = sshll.u32 %s248_s29, 4  ;;  %v229_v7 = vadd.f32 %v425_v3, %v209_v2  ;;  %v211_v8 = vld [vmem:[%s168_s14 + $0x18] sm:$0xff]  ;;  %v427_v9 = vld [vmem:[%s178_s8 + $0x3] ss:$0 sm:$0xff]  ;;  %s252_s24 = int_to_ptr.hbm [resolvable:$true] %s251_s24 }
  0x40   : > { %v230_v10 = vadd.f32 %v426_v6, %v210_v5  ;;  %v231_v11 = vadd.f32 %v427_v9, %v211_v8  ;;  %s237_s13 = scalar_lea.sflag [#allocation4], %s696_s30  ;;  %s502_s20 = sshra.s32 %s252_s24, 4  ;;  %s503_s20 = int_to_ptr.hbm [resolvable:$true] %s502_s20 }
  0x41   : > { %232 = vst [vmem:[%s204_s3] sm:$0xff] %v228_v4  ;;  %s504_s25 = scalar_lea.hbm %s503_s20, 32  ;;  %s508_s27 = scalar_lea.hbm %s744_s2, 128 }
  0x42   : > { %233 = vst [vmem:[%s204_s3 + $0x8] sm:$0xff] %v229_v7  ;;  %p505_p6 = scmp.ne.s32.totalorder %s503_s20, %s504_s25  ;;  %p509_p9 = scmp.lt.s32.totalorder %s503_s20, %s744_s2 }
  0x43   : > { %234 = vst [vmem:[%s204_s3 + $0x10] sm:$0xff] %v230_v10  ;;  %p510_p1 = scmp.lt.s32.totalorder %s508_s27, %s504_s25 }
  0x44   : > { %235 = vst [vmem:[%s204_s3 + $0x18] sm:$0xff] %v231_v11  ;;  %p506_p12 = pnand %p505_p6, %p630_p10 }
  0x45   : > { %p511_p3 = por %p510_p1, %p509_p9 }
  0x46   : > { %p507_p2 = pneg %p506_p12 }
  0x48   : > { %p512_p13 = pnand %p511_p3, %p507_p2 }
  0x4a   : > { %515 = shalt.err (!%p512_p13)
}
  0x4b   : > { %s564_s30 = smov 128   ;;  %s565_s14 = smov 8  }
  0x4c   : > { %371 = dma.vmem_to_hbm [thread:$0]  (%p630_p10), %s250_s5, 512, %s252_s24, %s237_s13, %s564_s30, %s564_s30, %s565_s14  }
  0x4d PF: > { %p385_p0 = scmp.ge.s32.totalorder %s558_s12, 2  ;;  %s266_s4 = sand.u32 1, %s546_s9  }
  0x4e   : > { %s267_s26 = scalar_lea.sflag [#allocation4], %s266_s4 }
  0x4f   : > { %p381_p4 = pnand %p385_p0, %p634_p11 }
  0x51   : > { %p382_p5 = pneg %p381_p4 }
  0x53   : > { %541 = dma.done.wait (%p382_p5), %s267_s26, 512  }
  0x54   : > { %543 = vsyncadd (%p382_p5), %s267_s26, 4294966784  ;;  %p18_p7 = scmp.ge.s32.totalorder %s606_s15, 6   ;;  %s751_s9 = smov %s550_s10 }
  0x55   : > { %s752_s10 = smov %s554_s11  ;;  %s753_s11 = smov %s618_s18 }
  0x56   : > { %s754_s12 = smov %s606_s15  ;;  %20 = sbr.rel (!%p18_p7) target bundleno = 7 (0x7), region = 86 }
  0x5b   :  { %273 = vsyncpa [#allocation3], 1 }
  0x5c   :  { %275 = vsyncpa [#allocation3 + $0x1], 1 }
  0x5d   :  { %276 = vsyncpa [#allocation6], 1 }
  0x5e   :  { %278 = vsyncpa [#allocation6 + $0x1], 1 }
  0x5f   :  { %279 = vsyncpa [#allocation4], 1 }
  0x60   :  { %281 = vsyncpa [#allocation4 + $0x1], 1 }

</bundles_post_ra>
